<compile_context>
chip_gen: v7x
topology: tpu7x:2x2x1
jax: 0.10.0
libtpu: 0.0.40
codegen_flags: <defaults>
</compile_context>

<pallas_src>
import functools

import jax
import jax.numpy as jnp
from jax.experimental import pallas as pl
from jax.experimental.pallas import tpu as pltpu


# ----------------------------- Pallas kernel --------------------------------
def gru_linear_kernel(
    x_ref,      # (T*B, D)       time-major flattened input (layout done in the wrapper)
    wi_ref,     # (D, 3H)        fused input->gate weights  [W_ir | W_iz | W_in] (transposed)
    bgx_ref,    # (1, 3H)        fused gx bias [b_ir+b_hr | b_iz+b_hz | b_in]
    bhn_ref,    # (1, H)         b_hn (must stay inside the r*(.) term)
    wstep_ref,  # (T-1, H, 3H+O) per-step fused recurrent weight [Wh_cat | wlin[t]]
    wlast_ref,  # (H, O)         wlin[T-1]
    blin_ref,   # (1, O)         linear bias
    out_ref,    # (B, O)         flattened model output
):
    TB, _ = x_ref.shape
    H = bhn_ref.shape[-1]
    T = wstep_ref.shape[0] + 1
    B = TB // T

    # Hoisted input projection: all timesteps in one MXU push (off the serial chain).
    gx_all = (
        jnp.dot(x_ref[...], wi_ref[...], preferred_element_type=jnp.float32)
        + bgx_ref[...]
    )  # (T*B, 3H)

    bhn = bhn_ref[...]  # (1, H)

    # Linear accumulator initialized with the bias; stays in vregs the whole kernel.
    acc = jnp.broadcast_to(blin_ref[...], out_ref.shape).astype(jnp.float32)  # (B, O)

    # t = 0: h_{-1} = 0 -> the recurrent matmul is identically zero, skip it entirely.
    gx = gx_all[0:B, :]
    r = jax.nn.sigmoid(gx[:, 0 * H:1 * H])
    z = jax.nn.sigmoid(gx[:, 1 * H:2 * H])
    n = jnp.tanh(gx[:, 2 * H:3 * H] + r * bhn)
    h = (1.0 - z) * n

    # T is small and static -> full unroll with static indices (max scheduler visibility).
    for t in range(1, T):
        # ONE fused matmul per step: cols [0:3H] are the recurrent gate pre-activations,
        # cols [3H:] are h_{t-1} @ wlin[t-1] (linear-layer contribution of h_{t-1}).
        fused = jnp.dot(h, wstep_ref[t - 1], preferred_element_type=jnp.float32)  # (B, 3H+O)
        acc = acc + fused[:, 3 * H:]

        gx = gx_all[t * B:(t + 1) * B, :]
        # PyTorch GRU gate equations (gate order r, z, n):
        r = jax.nn.sigmoid(gx[:, 0 * H:1 * H] + fused[:, 0 * H:1 * H])
        z = jax.nn.sigmoid(gx[:, 1 * H:2 * H] + fused[:, 1 * H:2 * H])
        n = jnp.tanh(gx[:, 2 * H:3 * H] + r * (fused[:, 2 * H:3 * H] + bhn))
        h = (1.0 - z) * n + z * h

    # Final linear contribution from h_{T-1}.
    acc = acc + jnp.dot(h, wlast_ref[...], preferred_element_type=jnp.float32)
    out_ref[...] = acc


# ------------------------------- wrapper -------------------------------------
@functools.partial(jax.jit, static_argnames=("output_feature_dims",))
def model_forward(x, fused_params, *, output_feature_dims):
    """x: (B, T, D) float32 -> (B, output_seq_len, output_feature_dims)."""
    B, T, D = x.shape
    O = fused_params["blin"].shape[-1]

    # Layout work lives in the wrapper (cheap XLA ops), not in the kernel:
    # time-major flatten so the kernel's per-step gx slice is a contiguous row block.
    x_tm = jnp.transpose(x, (1, 0, 2)).reshape(T * B, D)

    vmem = pl.BlockSpec(memory_space=pltpu.MemorySpace.VMEM)
    out = pl.pallas_call(
        gru_linear_kernel,
        out_shape=jax.ShapeDtypeStruct((B, O), jnp.float32),
        in_specs=[vmem] * 7,
        out_specs=vmem,
    )(
        x_tm,
        fused_params["wi"],
        fused_params["bgx"],
        fused_params["bhn"],
        fused_params["wstep"],
        fused_params["wlast"],
        fused_params["blin"],
    )
    return out.reshape(B, -1, output_feature_dims)


def fuse_params(params):
    """Offline weight fusion so the kernel sees 7 operands and 1 matmul per serial step."""
    T, H, O = params["wlin"].shape

    wi_cat = jnp.concatenate([params["wir"], params["wiz"], params["win"]], axis=1)  # (D, 3H)
    wh_cat = jnp.concatenate([params["whr"], params["whz"], params["whn"]], axis=1)  # (H, 3H)

    # Fold the hidden-side r/z biases into the (time-independent) input-projection bias.
    # b_hn must stay separate because it sits inside the r * (W_hn h + b_hn) term.
    bgx = jnp.concatenate(
        [params["bir"] + params["bhr"],
         params["biz"] + params["bhz"],
         params["bin"]],
        axis=1,
    )  # (1, 3H)

    # Per-step fused recurrent weight: [Wh_cat | wlin[t]] for t = 0..T-2 (used at step t+1
    # with input h_t); wlin[T-1] is applied once after the loop.
    wstep = jnp.concatenate(
        [jnp.broadcast_to(wh_cat[None], (T - 1, H, 3 * H)), params["wlin"][: T - 1]],
        axis=-1,
    )  # (T-1, H, 3H+O)

    return {
        "wi": wi_cat,
        "bgx": bgx,
        "bhn": params["bhn"],        # (1, H)
        "wstep": wstep,
        "wlast": params["wlin"][T - 1],  # (H, O)
        "blin": params["blin"],      # (1, O)
    }


# ---------------------------- pure-JAX reference ------------------------------
def model_reference(x, params, *, output_feature_dims):
    B, T, D = x.shape
    H = params["whr"].shape[0]
    h = jnp.zeros((B, H), jnp.float32)
    hs = []
    for t in range(T):
        x_t = x[:, t, :]
        r = jax.nn.sigmoid(x_t @ params["wir"] + params["bir"]
                           + h @ params["whr"] + params["bhr"])
        z = jax.nn.sigmoid(x_t @ params["wiz"] + params["biz"]
                           + h @ params["whz"] + params["bhz"])
        n = jnp.tanh(x_t @ params["win"] + params["bin"]
                     + r * (h @ params["whn"] + params["bhn"]))
        h = (1.0 - z) * n + z * h
        hs.append(h)
    seq = jnp.stack(hs, axis=1)                         # (B, T, H)
    flat = seq.reshape(B, -1)                           # (B, T*H)
    wlin_flat = params["wlin"].reshape(T * H, -1)       # (T*H, O)
    out = flat @ wlin_flat + params["blin"]
    return out.reshape(B, -1, output_feature_dims)


# ---------------------------------- main --------------------------------------
if __name__ == "__main__":
    # cfg_model (synthetic, small):
    B = 2                    # batch
    T = 8                    # input sequence length
    D = 4                    # input_feature_dims
    H = 32                   # hidden_dims
    OUT_SEQ = 4              # output_seq_len
    OUT_FEAT = 3             # output_feature_dims
    O = OUT_SEQ * OUT_FEAT   # linear output dim

    key = jax.random.PRNGKey(0)
    ks = jax.random.split(key, 16)

    def uniform(k, shape, bound):
        return jax.random.uniform(k, shape, jnp.float32, -bound, bound)

    gru_bound = 1.0 / jnp.sqrt(H)
    lin_bound = 1.0 / jnp.sqrt(T * H)

    params = {
        # input->gate weights (stored transposed: (D, H))
        "wir": uniform(ks[0], (D, H), gru_bound),
        "wiz": uniform(ks[1], (D, H), gru_bound),
        "win": uniform(ks[2], (D, H), gru_bound),
        # hidden->gate weights (stored transposed: (H, H))
        "whr": uniform(ks[3], (H, H), gru_bound),
        "whz": uniform(ks[4], (H, H), gru_bound),
        "whn": uniform(ks[5], (H, H), gru_bound),
        # biases (1, H)
        "bir": uniform(ks[6], (1, H), gru_bound),
        "biz": uniform(ks[7], (1, H), gru_bound),
        "bin": uniform(ks[8], (1, H), gru_bound),
        "bhr": uniform(ks[9], (1, H), gru_bound),
        "bhz": uniform(ks[10], (1, H), gru_bound),
        "bhn": uniform(ks[11], (1, H), gru_bound),
        # linear layer: weight (T*H, O) stored as (T, H, O).  When loading real PyTorch
        # weights this must be linear.weight.T.reshape(T, H, O) to match the flatten order.
        "wlin": uniform(ks[12], (T, H, O), lin_bound),
        "blin": uniform(ks[13], (1, O), lin_bound),
    }
    fused = fuse_params(params)

    x = jax.random.normal(ks[14], (B, T, D), jnp.float32)

    out = model_forward(x, fused, output_feature_dims=OUT_FEAT)
    out = jax.block_until_ready(out)

    ref = model_reference(x, params, output_feature_dims=OUT_FEAT)
    assert out.shape == (B, OUT_SEQ, OUT_FEAT), out.shape
    assert jnp.allclose(out, ref, atol=1e-4, rtol=1e-4), "mismatch vs reference"

    print("KERNEL_OK")
</pallas_src>

<mosaic_0001>
module attributes {stable_mosaic.version = 11 : i64} {
  func.func @gru_linear_kernel(%arg0: memref<16x4xf32, #tpu.memory_space<vmem>>, %arg1: memref<4x96xf32, #tpu.memory_space<vmem>>, %arg2: memref<1x96xf32, #tpu.memory_space<vmem>>, %arg3: memref<1x32xf32, #tpu.memory_space<vmem>>, %arg4: memref<7x32x108xf32, #tpu.memory_space<vmem>>, %arg5: memref<32x12xf32, #tpu.memory_space<vmem>>, %arg6: memref<1x12xf32, #tpu.memory_space<vmem>>, %arg7: memref<2x12xf32, #tpu.memory_space<vmem>>) attributes {dimension_semantics = [], scalar_prefetch = 0 : i64, scratch_operands = 0 : i64, tpu.core_type = #tpu.core_type<tc>} {
    %c0 = arith.constant 0 : index
    %c0_0 = arith.constant 0 : index
    %0 = vector.load %arg0[%c0, %c0_0] : memref<16x4xf32, #tpu.memory_space<vmem>>, vector<16x4xf32>
    %c0_1 = arith.constant 0 : index
    %c0_2 = arith.constant 0 : index
    %1 = vector.load %arg1[%c0_1, %c0_2] : memref<4x96xf32, #tpu.memory_space<vmem>>, vector<4x96xf32>
    %cst = arith.constant dense<0.000000e+00> : vector<16x96xf32>
    %2 = tpu.matmul %0, %1, %cst {dimension_numbers = #tpu.dot_dimension_numbers<[1], [0], [0], [1], [0, 0, 1, 1], [], []>} : vector<16x4xf32>, vector<4x96xf32>, vector<16x96xf32> -> vector<16x96xf32>
    %c0_3 = arith.constant 0 : index
    %c0_4 = arith.constant 0 : index
    %3 = vector.load %arg2[%c0_3, %c0_4] : memref<1x96xf32, #tpu.memory_space<vmem>>, vector<1x96xf32>
    %4 = vector.broadcast %3 : vector<1x96xf32> to vector<16x96xf32>
    %5 = arith.addf %2, %4 : vector<16x96xf32>
    %c0_5 = arith.constant 0 : index
    %c0_6 = arith.constant 0 : index
    %6 = vector.load %arg3[%c0_5, %c0_6] : memref<1x32xf32, #tpu.memory_space<vmem>>, vector<1x32xf32>
    %c0_7 = arith.constant 0 : index
    %c0_8 = arith.constant 0 : index
    %7 = vector.load %arg6[%c0_7, %c0_8] : memref<1x12xf32, #tpu.memory_space<vmem>>, vector<1x12xf32>
    %8 = vector.shape_cast %7 : vector<1x12xf32> to vector<1x12xf32>
    %9 = vector.broadcast %8 : vector<1x12xf32> to vector<2x12xf32>
    %10 = vector.extract_strided_slice %5 {offsets = [0, 0], sizes = [2, 96], strides = [1, 1]} : vector<16x96xf32> to vector<2x96xf32>
    %11 = vector.extract_strided_slice %10 {offsets = [0, 0], sizes = [2, 32], strides = [1, 1]} : vector<2x96xf32> to vector<2x32xf32>
    %12 = arith.negf %11 : vector<2x32xf32>
    %13 = math.exp %12 : vector<2x32xf32>
    %cst_9 = arith.constant 1.000000e+00 : f32
    %14 = vector.broadcast %cst_9 : f32 to vector<2x32xf32>
    %15 = arith.addf %14, %13 : vector<2x32xf32>
    %16 = arith.divf %14, %15 : vector<2x32xf32>
    %17 = vector.extract_strided_slice %10 {offsets = [0, 32], sizes = [2, 32], strides = [1, 1]} : vector<2x96xf32> to vector<2x32xf32>
    %18 = arith.negf %17 : vector<2x32xf32>
    %19 = math.exp %18 : vector<2x32xf32>
    %cst_10 = arith.constant 1.000000e+00 : f32
    %20 = vector.broadcast %cst_10 : f32 to vector<2x32xf32>
    %21 = arith.addf %20, %19 : vector<2x32xf32>
    %22 = arith.divf %20, %21 : vector<2x32xf32>
    %23 = vector.extract_strided_slice %10 {offsets = [0, 64], sizes = [2, 32], strides = [1, 1]} : vector<2x96xf32> to vector<2x32xf32>
    %24 = vector.broadcast %6 : vector<1x32xf32> to vector<2x32xf32>
    %25 = arith.mulf %16, %24 : vector<2x32xf32>
    %26 = arith.addf %23, %25 : vector<2x32xf32>
    %27 = math.tanh %26 : vector<2x32xf32>
    %cst_11 = arith.constant 1.000000e+00 : f32
    %28 = vector.broadcast %cst_11 : f32 to vector<2x32xf32>
    %29 = arith.subf %28, %22 : vector<2x32xf32>
    %30 = arith.mulf %29, %27 : vector<2x32xf32>
    %c0_12 = arith.constant 0 : index
    %c0_13 = arith.constant 0 : index
    %c0_14 = arith.constant 0 : index
    %31 = vector.load %arg4[%c0_12, %c0_13, %c0_14] : memref<7x32x108xf32, #tpu.memory_space<vmem>>, vector<1x32x108xf32>
    %32 = vector.shape_cast %31 : vector<1x32x108xf32> to vector<32x108xf32>
    %cst_15 = arith.constant dense<0.000000e+00> : vector<2x108xf32>
    %33 = tpu.matmul %30, %32, %cst_15 {dimension_numbers = #tpu.dot_dimension_numbers<[1], [0], [0], [1], [0, 0, 1, 1], [], []>} : vector<2x32xf32>, vector<32x108xf32>, vector<2x108xf32> -> vector<2x108xf32>
    %34 = vector.extract_strided_slice %33 {offsets = [0, 96], sizes = [2, 12], strides = [1, 1]} : vector<2x108xf32> to vector<2x12xf32>
    %35 = arith.addf %9, %34 : vector<2x12xf32>
    %36 = vector.extract_strided_slice %5 {offsets = [2, 0], sizes = [2, 96], strides = [1, 1]} : vector<16x96xf32> to vector<2x96xf32>
    %37 = vector.extract_strided_slice %36 {offsets = [0, 0], sizes = [2, 32], strides = [1, 1]} : vector<2x96xf32> to vector<2x32xf32>
    %38 = vector.extract_strided_slice %33 {offsets = [0, 0], sizes = [2, 32], strides = [1, 1]} : vector<2x108xf32> to vector<2x32xf32>
    %39 = arith.addf %37, %38 : vector<2x32xf32>
    %40 = arith.negf %39 : vector<2x32xf32>
    %41 = math.exp %40 : vector<2x32xf32>
    %cst_16 = arith.constant 1.000000e+00 : f32
    %42 = vector.broadcast %cst_16 : f32 to vector<2x32xf32>
    %43 = arith.addf %42, %41 : vector<2x32xf32>
    %44 = arith.divf %42, %43 : vector<2x32xf32>
    %45 = vector.extract_strided_slice %36 {offsets = [0, 32], sizes = [2, 32], strides = [1, 1]} : vector<2x96xf32> to vector<2x32xf32>
    %46 = vector.extract_strided_slice %33 {offsets = [0, 32], sizes = [2, 32], strides = [1, 1]} : vector<2x108xf32> to vector<2x32xf32>
    %47 = arith.addf %45, %46 : vector<2x32xf32>
    %48 = arith.negf %47 : vector<2x32xf32>
    %49 = math.exp %48 : vector<2x32xf32>
    %cst_17 = arith.constant 1.000000e+00 : f32
    %50 = vector.broadcast %cst_17 : f32 to vector<2x32xf32>
    %51 = arith.addf %50, %49 : vector<2x32xf32>
    %52 = arith.divf %50, %51 : vector<2x32xf32>
    %53 = vector.extract_strided_slice %36 {offsets = [0, 64], sizes = [2, 32], strides = [1, 1]} : vector<2x96xf32> to vector<2x32xf32>
    %54 = vector.extract_strided_slice %33 {offsets = [0, 64], sizes = [2, 32], strides = [1, 1]} : vector<2x108xf32> to vector<2x32xf32>
    %55 = vector.broadcast %6 : vector<1x32xf32> to vector<2x32xf32>
    %56 = arith.addf %54, %55 : vector<2x32xf32>
    %57 = arith.mulf %44, %56 : vector<2x32xf32>
    %58 = arith.addf %53, %57 : vector<2x32xf32>
    %59 = math.tanh %58 : vector<2x32xf32>
    %cst_18 = arith.constant 1.000000e+00 : f32
    %60 = vector.broadcast %cst_18 : f32 to vector<2x32xf32>
    %61 = arith.subf %60, %52 : vector<2x32xf32>
    %62 = arith.mulf %61, %59 : vector<2x32xf32>
    %63 = arith.mulf %52, %30 : vector<2x32xf32>
    %64 = arith.addf %62, %63 : vector<2x32xf32>
    %c1 = arith.constant 1 : index
    %c0_19 = arith.constant 0 : index
    %c0_20 = arith.constant 0 : index
    %65 = vector.load %arg4[%c1, %c0_19, %c0_20] : memref<7x32x108xf32, #tpu.memory_space<vmem>>, vector<1x32x108xf32>
    %66 = vector.shape_cast %65 : vector<1x32x108xf32> to vector<32x108xf32>
    %cst_21 = arith.constant dense<0.000000e+00> : vector<2x108xf32>
    %67 = tpu.matmul %64, %66, %cst_21 {dimension_numbers = #tpu.dot_dimension_numbers<[1], [0], [0], [1], [0, 0, 1, 1], [], []>} : vector<2x32xf32>, vector<32x108xf32>, vector<2x108xf32> -> vector<2x108xf32>
    %68 = vector.extract_strided_slice %67 {offsets = [0, 96], sizes = [2, 12], strides = [1, 1]} : vector<2x108xf32> to vector<2x12xf32>
    %69 = arith.addf %35, %68 : vector<2x12xf32>
    %70 = vector.extract_strided_slice %5 {offsets = [4, 0], sizes = [2, 96], strides = [1, 1]} : vector<16x96xf32> to vector<2x96xf32>
    %71 = vector.extract_strided_slice %70 {offsets = [0, 0], sizes = [2, 32], strides = [1, 1]} : vector<2x96xf32> to vector<2x32xf32>
    %72 = vector.extract_strided_slice %67 {offsets = [0, 0], sizes = [2, 32], strides = [1, 1]} : vector<2x108xf32> to vector<2x32xf32>
    %73 = arith.addf %71, %72 : vector<2x32xf32>
    %74 = arith.negf %73 : vector<2x32xf32>
    %75 = math.exp %74 : vector<2x32xf32>
    %cst_22 = arith.constant 1.000000e+00 : f32
    %76 = vector.broadcast %cst_22 : f32 to vector<2x32xf32>
    %77 = arith.addf %76, %75 : vector<2x32xf32>
    %78 = arith.divf %76, %77 : vector<2x32xf32>
    %79 = vector.extract_strided_slice %70 {offsets = [0, 32], sizes = [2, 32], strides = [1, 1]} : vector<2x96xf32> to vector<2x32xf32>
    %80 = vector.extract_strided_slice %67 {offsets = [0, 32], sizes = [2, 32], strides = [1, 1]} : vector<2x108xf32> to vector<2x32xf32>
    %81 = arith.addf %79, %80 : vector<2x32xf32>
    %82 = arith.negf %81 : vector<2x32xf32>
    %83 = math.exp %82 : vector<2x32xf32>
    %cst_23 = arith.constant 1.000000e+00 : f32
    %84 = vector.broadcast %cst_23 : f32 to vector<2x32xf32>
    %85 = arith.addf %84, %83 : vector<2x32xf32>
    %86 = arith.divf %84, %85 : vector<2x32xf32>
    %87 = vector.extract_strided_slice %70 {offsets = [0, 64], sizes = [2, 32], strides = [1, 1]} : vector<2x96xf32> to vector<2x32xf32>
    %88 = vector.extract_strided_slice %67 {offsets = [0, 64], sizes = [2, 32], strides = [1, 1]} : vector<2x108xf32> to vector<2x32xf32>
    %89 = vector.broadcast %6 : vector<1x32xf32> to vector<2x32xf32>
    %90 = arith.addf %88, %89 : vector<2x32xf32>
    %91 = arith.mulf %78, %90 : vector<2x32xf32>
    %92 = arith.addf %87, %91 : vector<2x32xf32>
    %93 = math.tanh %92 : vector<2x32xf32>
    %cst_24 = arith.constant 1.000000e+00 : f32
    %94 = vector.broadcast %cst_24 : f32 to vector<2x32xf32>
    %95 = arith.subf %94, %86 : vector<2x32xf32>
    %96 = arith.mulf %95, %93 : vector<2x32xf32>
    %97 = arith.mulf %86, %64 : vector<2x32xf32>
    %98 = arith.addf %96, %97 : vector<2x32xf32>
    %c2 = arith.constant 2 : index
    %c0_25 = arith.constant 0 : index
    %c0_26 = arith.constant 0 : index
    %99 = vector.load %arg4[%c2, %c0_25, %c0_26] : memref<7x32x108xf32, #tpu.memory_space<vmem>>, vector<1x32x108xf32>
    %100 = vector.shape_cast %99 : vector<1x32x108xf32> to vector<32x108xf32>
    %cst_27 = arith.constant dense<0.000000e+00> : vector<2x108xf32>
    %101 = tpu.matmul %98, %100, %cst_27 {dimension_numbers = #tpu.dot_dimension_numbers<[1], [0], [0], [1], [0, 0, 1, 1], [], []>} : vector<2x32xf32>, vector<32x108xf32>, vector<2x108xf32> -> vector<2x108xf32>
    %102 = vector.extract_strided_slice %101 {offsets = [0, 96], sizes = [2, 12], strides = [1, 1]} : vector<2x108xf32> to vector<2x12xf32>
    %103 = arith.addf %69, %102 : vector<2x12xf32>
    %104 = vector.extract_strided_slice %5 {offsets = [6, 0], sizes = [2, 96], strides = [1, 1]} : vector<16x96xf32> to vector<2x96xf32>
    %105 = vector.extract_strided_slice %104 {offsets = [0, 0], sizes = [2, 32], strides = [1, 1]} : vector<2x96xf32> to vector<2x32xf32>
    %106 = vector.extract_strided_slice %101 {offsets = [0, 0], sizes = [2, 32], strides = [1, 1]} : vector<2x108xf32> to vector<2x32xf32>
    %107 = arith.addf %105, %106 : vector<2x32xf32>
    %108 = arith.negf %107 : vector<2x32xf32>
    %109 = math.exp %108 : vector<2x32xf32>
    %cst_28 = arith.constant 1.000000e+00 : f32
    %110 = vector.broadcast %cst_28 : f32 to vector<2x32xf32>
    %111 = arith.addf %110, %109 : vector<2x32xf32>
    %112 = arith.divf %110, %111 : vector<2x32xf32>
    %113 = vector.extract_strided_slice %104 {offsets = [0, 32], sizes = [2, 32], strides = [1, 1]} : vector<2x96xf32> to vector<2x32xf32>
    %114 = vector.extract_strided_slice %101 {offsets = [0, 32], sizes = [2, 32], strides = [1, 1]} : vector<2x108xf32> to vector<2x32xf32>
    %115 = arith.addf %113, %114 : vector<2x32xf32>
    %116 = arith.negf %115 : vector<2x32xf32>
    %117 = math.exp %116 : vector<2x32xf32>
    %cst_29 = arith.constant 1.000000e+00 : f32
    %118 = vector.broadcast %cst_29 : f32 to vector<2x32xf32>
    %119 = arith.addf %118, %117 : vector<2x32xf32>
    %120 = arith.divf %118, %119 : vector<2x32xf32>
    %121 = vector.extract_strided_slice %104 {offsets = [0, 64], sizes = [2, 32], strides = [1, 1]} : vector<2x96xf32> to vector<2x32xf32>
    %122 = vector.extract_strided_slice %101 {offsets = [0, 64], sizes = [2, 32], strides = [1, 1]} : vector<2x108xf32> to vector<2x32xf32>
    %123 = vector.broadcast %6 : vector<1x32xf32> to vector<2x32xf32>
    %124 = arith.addf %122, %123 : vector<2x32xf32>
    %125 = arith.mulf %112, %124 : vector<2x32xf32>
    %126 = arith.addf %121, %125 : vector<2x32xf32>
    %127 = math.tanh %126 : vector<2x32xf32>
    %cst_30 = arith.constant 1.000000e+00 : f32
    %128 = vector.broadcast %cst_30 : f32 to vector<2x32xf32>
    %129 = arith.subf %128, %120 : vector<2x32xf32>
    %130 = arith.mulf %129, %127 : vector<2x32xf32>
    %131 = arith.mulf %120, %98 : vector<2x32xf32>
    %132 = arith.addf %130, %131 : vector<2x32xf32>
    %c3 = arith.constant 3 : index
    %c0_31 = arith.constant 0 : index
    %c0_32 = arith.constant 0 : index
    %133 = vector.load %arg4[%c3, %c0_31, %c0_32] : memref<7x32x108xf32, #tpu.memory_space<vmem>>, vector<1x32x108xf32>
    %134 = vector.shape_cast %133 : vector<1x32x108xf32> to vector<32x108xf32>
    %cst_33 = arith.constant dense<0.000000e+00> : vector<2x108xf32>
    %135 = tpu.matmul %132, %134, %cst_33 {dimension_numbers = #tpu.dot_dimension_numbers<[1], [0], [0], [1], [0, 0, 1, 1], [], []>} : vector<2x32xf32>, vector<32x108xf32>, vector<2x108xf32> -> vector<2x108xf32>
    %136 = vector.extract_strided_slice %135 {offsets = [0, 96], sizes = [2, 12], strides = [1, 1]} : vector<2x108xf32> to vector<2x12xf32>
    %137 = arith.addf %103, %136 : vector<2x12xf32>
    %138 = vector.extract_strided_slice %5 {offsets = [8, 0], sizes = [2, 96], strides = [1, 1]} : vector<16x96xf32> to vector<2x96xf32>
    %139 = vector.extract_strided_slice %138 {offsets = [0, 0], sizes = [2, 32], strides = [1, 1]} : vector<2x96xf32> to vector<2x32xf32>
    %140 = vector.extract_strided_slice %135 {offsets = [0, 0], sizes = [2, 32], strides = [1, 1]} : vector<2x108xf32> to vector<2x32xf32>
    %141 = arith.addf %139, %140 : vector<2x32xf32>
    %142 = arith.negf %141 : vector<2x32xf32>
    %143 = math.exp %142 : vector<2x32xf32>
    %cst_34 = arith.constant 1.000000e+00 : f32
    %144 = vector.broadcast %cst_34 : f32 to vector<2x32xf32>
    %145 = arith.addf %144, %143 : vector<2x32xf32>
    %146 = arith.divf %144, %145 : vector<2x32xf32>
    %147 = vector.extract_strided_slice %138 {offsets = [0, 32], sizes = [2, 32], strides = [1, 1]} : vector<2x96xf32> to vector<2x32xf32>
    %148 = vector.extract_strided_slice %135 {offsets = [0, 32], sizes = [2, 32], strides = [1, 1]} : vector<2x108xf32> to vector<2x32xf32>
    %149 = arith.addf %147, %148 : vector<2x32xf32>
    %150 = arith.negf %149 : vector<2x32xf32>
    %151 = math.exp %150 : vector<2x32xf32>
    %cst_35 = arith.constant 1.000000e+00 : f32
    %152 = vector.broadcast %cst_35 : f32 to vector<2x32xf32>
    %153 = arith.addf %152, %151 : vector<2x32xf32>
    %154 = arith.divf %152, %153 : vector<2x32xf32>
    %155 = vector.extract_strided_slice %138 {offsets = [0, 64], sizes = [2, 32], strides = [1, 1]} : vector<2x96xf32> to vector<2x32xf32>
    %156 = vector.extract_strided_slice %135 {offsets = [0, 64], sizes = [2, 32], strides = [1, 1]} : vector<2x108xf32> to vector<2x32xf32>
    %157 = vector.broadcast %6 : vector<1x32xf32> to vector<2x32xf32>
    %158 = arith.addf %156, %157 : vector<2x32xf32>
    %159 = arith.mulf %146, %158 : vector<2x32xf32>
    %160 = arith.addf %155, %159 : vector<2x32xf32>
    %161 = math.tanh %160 : vector<2x32xf32>
    %cst_36 = arith.constant 1.000000e+00 : f32
    %162 = vector.broadcast %cst_36 : f32 to vector<2x32xf32>
    %163 = arith.subf %162, %154 : vector<2x32xf32>
    %164 = arith.mulf %163, %161 : vector<2x32xf32>
    %165 = arith.mulf %154, %132 : vector<2x32xf32>
    %166 = arith.addf %164, %165 : vector<2x32xf32>
    %c4 = arith.constant 4 : index
    %c0_37 = arith.constant 0 : index
    %c0_38 = arith.constant 0 : index
    %167 = vector.load %arg4[%c4, %c0_37, %c0_38] : memref<7x32x108xf32, #tpu.memory_space<vmem>>, vector<1x32x108xf32>
    %168 = vector.shape_cast %167 : vector<1x32x108xf32> to vector<32x108xf32>
    %cst_39 = arith.constant dense<0.000000e+00> : vector<2x108xf32>
    %169 = tpu.matmul %166, %168, %cst_39 {dimension_numbers = #tpu.dot_dimension_numbers<[1], [0], [0], [1], [0, 0, 1, 1], [], []>} : vector<2x32xf32>, vector<32x108xf32>, vector<2x108xf32> -> vector<2x108xf32>
    %170 = vector.extract_strided_slice %169 {offsets = [0, 96], sizes = [2, 12], strides = [1, 1]} : vector<2x108xf32> to vector<2x12xf32>
    %171 = arith.addf %137, %170 : vector<2x12xf32>
    %172 = vector.extract_strided_slice %5 {offsets = [10, 0], sizes = [2, 96], strides = [1, 1]} : vector<16x96xf32> to vector<2x96xf32>
    %173 = vector.extract_strided_slice %172 {offsets = [0, 0], sizes = [2, 32], strides = [1, 1]} : vector<2x96xf32> to vector<2x32xf32>
    %174 = vector.extract_strided_slice %169 {offsets = [0, 0], sizes = [2, 32], strides = [1, 1]} : vector<2x108xf32> to vector<2x32xf32>
    %175 = arith.addf %173, %174 : vector<2x32xf32>
    %176 = arith.negf %175 : vector<2x32xf32>
    %177 = math.exp %176 : vector<2x32xf32>
    %cst_40 = arith.constant 1.000000e+00 : f32
    %178 = vector.broadcast %cst_40 : f32 to vector<2x32xf32>
    %179 = arith.addf %178, %177 : vector<2x32xf32>
    %180 = arith.divf %178, %179 : vector<2x32xf32>
    %181 = vector.extract_strided_slice %172 {offsets = [0, 32], sizes = [2, 32], strides = [1, 1]} : vector<2x96xf32> to vector<2x32xf32>
    %182 = vector.extract_strided_slice %169 {offsets = [0, 32], sizes = [2, 32], strides = [1, 1]} : vector<2x108xf32> to vector<2x32xf32>
    %183 = arith.addf %181, %182 : vector<2x32xf32>
    %184 = arith.negf %183 : vector<2x32xf32>
    %185 = math.exp %184 : vector<2x32xf32>
    %cst_41 = arith.constant 1.000000e+00 : f32
    %186 = vector.broadcast %cst_41 : f32 to vector<2x32xf32>
    %187 = arith.addf %186, %185 : vector<2x32xf32>
    %188 = arith.divf %186, %187 : vector<2x32xf32>
    %189 = vector.extract_strided_slice %172 {offsets = [0, 64], sizes = [2, 32], strides = [1, 1]} : vector<2x96xf32> to vector<2x32xf32>
    %190 = vector.extract_strided_slice %169 {offsets = [0, 64], sizes = [2, 32], strides = [1, 1]} : vector<2x108xf32> to vector<2x32xf32>
    %191 = vector.broadcast %6 : vector<1x32xf32> to vector<2x32xf32>
    %192 = arith.addf %190, %191 : vector<2x32xf32>
    %193 = arith.mulf %180, %192 : vector<2x32xf32>
    %194 = arith.addf %189, %193 : vector<2x32xf32>
    %195 = math.tanh %194 : vector<2x32xf32>
    %cst_42 = arith.constant 1.000000e+00 : f32
    %196 = vector.broadcast %cst_42 : f32 to vector<2x32xf32>
    %197 = arith.subf %196, %188 : vector<2x32xf32>
    %198 = arith.mulf %197, %195 : vector<2x32xf32>
    %199 = arith.mulf %188, %166 : vector<2x32xf32>
    %200 = arith.addf %198, %199 : vector<2x32xf32>
    %c5 = arith.constant 5 : index
    %c0_43 = arith.constant 0 : index
    %c0_44 = arith.constant 0 : index
    %201 = vector.load %arg4[%c5, %c0_43, %c0_44] : memref<7x32x108xf32, #tpu.memory_space<vmem>>, vector<1x32x108xf32>
    %202 = vector.shape_cast %201 : vector<1x32x108xf32> to vector<32x108xf32>
    %cst_45 = arith.constant dense<0.000000e+00> : vector<2x108xf32>
    %203 = tpu.matmul %200, %202, %cst_45 {dimension_numbers = #tpu.dot_dimension_numbers<[1], [0], [0], [1], [0, 0, 1, 1], [], []>} : vector<2x32xf32>, vector<32x108xf32>, vector<2x108xf32> -> vector<2x108xf32>
    %204 = vector.extract_strided_slice %203 {offsets = [0, 96], sizes = [2, 12], strides = [1, 1]} : vector<2x108xf32> to vector<2x12xf32>
    %205 = arith.addf %171, %204 : vector<2x12xf32>
    %206 = vector.extract_strided_slice %5 {offsets = [12, 0], sizes = [2, 96], strides = [1, 1]} : vector<16x96xf32> to vector<2x96xf32>
    %207 = vector.extract_strided_slice %206 {offsets = [0, 0], sizes = [2, 32], strides = [1, 1]} : vector<2x96xf32> to vector<2x32xf32>
    %208 = vector.extract_strided_slice %203 {offsets = [0, 0], sizes = [2, 32], strides = [1, 1]} : vector<2x108xf32> to vector<2x32xf32>
    %209 = arith.addf %207, %208 : vector<2x32xf32>
    %210 = arith.negf %209 : vector<2x32xf32>
    %211 = math.exp %210 : vector<2x32xf32>
    %cst_46 = arith.constant 1.000000e+00 : f32
    %212 = vector.broadcast %cst_46 : f32 to vector<2x32xf32>
    %213 = arith.addf %212, %211 : vector<2x32xf32>
    %214 = arith.divf %212, %213 : vector<2x32xf32>
    %215 = vector.extract_strided_slice %206 {offsets = [0, 32], sizes = [2, 32], strides = [1, 1]} : vector<2x96xf32> to vector<2x32xf32>
    %216 = vector.extract_strided_slice %203 {offsets = [0, 32], sizes = [2, 32], strides = [1, 1]} : vector<2x108xf32> to vector<2x32xf32>
    %217 = arith.addf %215, %216 : vector<2x32xf32>
    %218 = arith.negf %217 : vector<2x32xf32>
    %219 = math.exp %218 : vector<2x32xf32>
    %cst_47 = arith.constant 1.000000e+00 : f32
    %220 = vector.broadcast %cst_47 : f32 to vector<2x32xf32>
    %221 = arith.addf %220, %219 : vector<2x32xf32>
    %222 = arith.divf %220, %221 : vector<2x32xf32>
    %223 = vector.extract_strided_slice %206 {offsets = [0, 64], sizes = [2, 32], strides = [1, 1]} : vector<2x96xf32> to vector<2x32xf32>
    %224 = vector.extract_strided_slice %203 {offsets = [0, 64], sizes = [2, 32], strides = [1, 1]} : vector<2x108xf32> to vector<2x32xf32>
    %225 = vector.broadcast %6 : vector<1x32xf32> to vector<2x32xf32>
    %226 = arith.addf %224, %225 : vector<2x32xf32>
    %227 = arith.mulf %214, %226 : vector<2x32xf32>
    %228 = arith.addf %223, %227 : vector<2x32xf32>
    %229 = math.tanh %228 : vector<2x32xf32>
    %cst_48 = arith.constant 1.000000e+00 : f32
    %230 = vector.broadcast %cst_48 : f32 to vector<2x32xf32>
    %231 = arith.subf %230, %222 : vector<2x32xf32>
    %232 = arith.mulf %231, %229 : vector<2x32xf32>
    %233 = arith.mulf %222, %200 : vector<2x32xf32>
    %234 = arith.addf %232, %233 : vector<2x32xf32>
    %c6 = arith.constant 6 : index
    %c0_49 = arith.constant 0 : index
    %c0_50 = arith.constant 0 : index
    %235 = vector.load %arg4[%c6, %c0_49, %c0_50] : memref<7x32x108xf32, #tpu.memory_space<vmem>>, vector<1x32x108xf32>
    %236 = vector.shape_cast %235 : vector<1x32x108xf32> to vector<32x108xf32>
    %cst_51 = arith.constant dense<0.000000e+00> : vector<2x108xf32>
    %237 = tpu.matmul %234, %236, %cst_51 {dimension_numbers = #tpu.dot_dimension_numbers<[1], [0], [0], [1], [0, 0, 1, 1], [], []>} : vector<2x32xf32>, vector<32x108xf32>, vector<2x108xf32> -> vector<2x108xf32>
    %238 = vector.extract_strided_slice %237 {offsets = [0, 96], sizes = [2, 12], strides = [1, 1]} : vector<2x108xf32> to vector<2x12xf32>
    %239 = arith.addf %205, %238 : vector<2x12xf32>
    %240 = vector.extract_strided_slice %5 {offsets = [14, 0], sizes = [2, 96], strides = [1, 1]} : vector<16x96xf32> to vector<2x96xf32>
    %241 = vector.extract_strided_slice %240 {offsets = [0, 0], sizes = [2, 32], strides = [1, 1]} : vector<2x96xf32> to vector<2x32xf32>
    %242 = vector.extract_strided_slice %237 {offsets = [0, 0], sizes = [2, 32], strides = [1, 1]} : vector<2x108xf32> to vector<2x32xf32>
    %243 = arith.addf %241, %242 : vector<2x32xf32>
    %244 = arith.negf %243 : vector<2x32xf32>
    %245 = math.exp %244 : vector<2x32xf32>
    %cst_52 = arith.constant 1.000000e+00 : f32
    %246 = vector.broadcast %cst_52 : f32 to vector<2x32xf32>
    %247 = arith.addf %246, %245 : vector<2x32xf32>
    %248 = arith.divf %246, %247 : vector<2x32xf32>
    %249 = vector.extract_strided_slice %240 {offsets = [0, 32], sizes = [2, 32], strides = [1, 1]} : vector<2x96xf32> to vector<2x32xf32>
    %250 = vector.extract_strided_slice %237 {offsets = [0, 32], sizes = [2, 32], strides = [1, 1]} : vector<2x108xf32> to vector<2x32xf32>
    %251 = arith.addf %249, %250 : vector<2x32xf32>
    %252 = arith.negf %251 : vector<2x32xf32>
    %253 = math.exp %252 : vector<2x32xf32>
    %cst_53 = arith.constant 1.000000e+00 : f32
    %254 = vector.broadcast %cst_53 : f32 to vector<2x32xf32>
    %255 = arith.addf %254, %253 : vector<2x32xf32>
    %256 = arith.divf %254, %255 : vector<2x32xf32>
    %257 = vector.extract_strided_slice %240 {offsets = [0, 64], sizes = [2, 32], strides = [1, 1]} : vector<2x96xf32> to vector<2x32xf32>
    %258 = vector.extract_strided_slice %237 {offsets = [0, 64], sizes = [2, 32], strides = [1, 1]} : vector<2x108xf32> to vector<2x32xf32>
    %259 = vector.broadcast %6 : vector<1x32xf32> to vector<2x32xf32>
    %260 = arith.addf %258, %259 : vector<2x32xf32>
    %261 = arith.mulf %248, %260 : vector<2x32xf32>
    %262 = arith.addf %257, %261 : vector<2x32xf32>
    %263 = math.tanh %262 : vector<2x32xf32>
    %cst_54 = arith.constant 1.000000e+00 : f32
    %264 = vector.broadcast %cst_54 : f32 to vector<2x32xf32>
    %265 = arith.subf %264, %256 : vector<2x32xf32>
    %266 = arith.mulf %265, %263 : vector<2x32xf32>
    %267 = arith.mulf %256, %234 : vector<2x32xf32>
    %268 = arith.addf %266, %267 : vector<2x32xf32>
    %c0_55 = arith.constant 0 : index
    %c0_56 = arith.constant 0 : index
    %269 = vector.load %arg5[%c0_55, %c0_56] : memref<32x12xf32, #tpu.memory_space<vmem>>, vector<32x12xf32>
    %cst_57 = arith.constant dense<0.000000e+00> : vector<2x12xf32>
    %270 = tpu.matmul %268, %269, %cst_57 {dimension_numbers = #tpu.dot_dimension_numbers<[1], [0], [0], [1], [0, 0, 1, 1], [], []>} : vector<2x32xf32>, vector<32x12xf32>, vector<2x12xf32> -> vector<2x12xf32>
    %271 = arith.addf %239, %270 : vector<2x12xf32>
    %c0_58 = arith.constant 0 : index
    %c0_59 = arith.constant 0 : index
    %272 = vector.load %arg7[%c0_58, %c0_59] : memref<2x12xf32, #tpu.memory_space<vmem>>, vector<2x12xf32>
    tpu.vector_store %arg7[%c0_58, %c0_59], %271 {strides = array<i32>} : memref<2x12xf32, #tpu.memory_space<vmem>>, vector<2x12xf32>,
    return
  }
}

</mosaic_0001>

<bundles_post_ra>
// kernel: model_forward.1
= control target key start
LH: loop header
LB: loop body
LE: loop exit
PB: predicated region body
PF: predicated region fallthrough
CT: control target
= control target key end

     0   :  { %12 = vsyncpa [#allocation3], 0  ;;  %s1367_s24 = smov [#allocation2]   ;;  %s1592_s0 = inlined_call_operand.vmem [shape: f32[16,4], index: 0, kind: input, shape index: {}]   ;;  %s1593_s1 = inlined_call_operand.vmem [shape: f32[4,96], index: 1, kind: input, shape index: {}]   ;;  %s1594_s2 = inlined_call_operand.vmem [shape: f32[1,96], index: 2, kind: input, shape index: {}]   ;;  %s1595_s3 = inlined_call_operand.vmem [shape: f32[1,32], index: 3, kind: input, shape index: {}]   ;;  %s1596_s4 = inlined_call_operand.hbm [shape: f32[7,32,108], index: 4, kind: input, shape index: {}]   ;;  %s1597_s5 = inlined_call_operand.vmem [shape: f32[32,12], index: 5, kind: input, shape index: {}]   ;;  %s1598_s6 = inlined_call_operand.vmem [shape: f32[1,12], index: 6, kind: input, shape index: {}]   ;;  %s1599_s7 = inlined_call_operand.vmem [shape: f32[2,12], index: 7, kind: output, shape index: {}]  }
   0x1   :  { %s26_s25 = sshll.u32 %s1367_s24, 4  ;;  %s1343_s28 = scalar_lea.hbm %s1596_s4, 3584  ;;  %s27_s25 = int_to_ptr.vmem [resolvable:$true] %s26_s25 }
   0x2   :  { %p1344_p0 = scmp.ne.s32.totalorder %s1596_s4, %s1343_s28  ;;  %p1347_p1 = scmp.lt.u32.totalorder %s1343_s28, %s1596_s4 }
   0x4   :  { %p1349_p2 = pnand %p1347_p1, %p1344_p0 }
   0x6   :  { %1352 = shalt.err (!%p1349_p2)
}
   0x7   :  { %s1353_s10 = scalar_lea.vmem %s27_s25, 3584  ;;  %p1358_p4 = scmp.lt.s32.totalorder %s27_s25, %s27_s25 }
   0x8   :  { %p1354_p3 = scmp.ne.s32.totalorder %s27_s25, %s1353_s10  ;;  %p1359_p5 = scmp.lt.s32.totalorder %s1353_s10, %s1353_s10 }
   0xa   :  { %p1360_p6 = por %p1359_p5, %p1358_p4 }
   0xc   :  { %p1361_p7 = pnand %p1360_p6, %p1354_p3 }
   0xe   :  { %1364 = shalt.err (!%p1361_p7)
}
   0xf   :  { %s1368_s11 = smov 128   ;;  %s1369_s12 = smov 8  }
  0x10   :  { %32 = dma.hbm_to_vmem [thread:$0]  %s1596_s4, 3584, %s27_s25, [#allocation3], %s1368_s11, %s1368_s11, %s1369_s12  }
  0x11   :  { %1365 = dma.done.wait [#allocation3], 3584  }
  0x12   :  { %1366 = vsyncadd [#allocation3], 4294963712  ;;  %vm57_vm0 = vcmask 1043456   ;;  %vm50_vm1 = vcmask 31744   ;;  %v42_v0 = vld [vmem:[%s1593_s1] sm:$0xf] }
  0x13   :  { %v40_v1 = vld [vmem:[%s1592_s0] sm:$0xff]  ;;  %v41_v2 = vld [vmem:[%s1592_s0 + $0x8] sm:$0xff]  ;;  %1145 = vmatprep.subr.msk.mxu0 %vm57_vm0, %v42_v0  ;;  %s1370_s22 = smov 64   ;;  %v171_v18 = vld [vmem:[#allocation2 + $0x10] sm:$0xff]  ;;  %v1371_v19 = vmov 0.0|0.0   ;;  %vm1372_vm2 = vmmov 0  }
  0x14   :  { %1147 = vmatprep.mubr.msk.f32.mxu0 %vm50_vm1, %v40_v1  ;;  %1146 = vmatpush3.msk.msra.mxu0 %vm57_vm0, %v42_v0  ;;  %v1080_v3 = vld [vmem:[%s1594_s2] ss:$0 sm:$0xff]  ;;  %v170_v17 = vld [vmem:[#allocation2 + $0x8] sm:$0xff]  ;;  %v172_v21 = vld [vmem:[#allocation2 + $0x18] sm:$0xff]  ;;  %v1373_v22 = vmov 0.0   ;;  %s1374_s2 = smov 96  }
  0x15   :  { %1148 = vmatmul.mubr.msk.f32.vlgmr.msra.gmra.mrb[0].mxu0 %vm50_vm1, %v41_v2  ;;  %v1086_v11 = vld [vmem:[%s1595_s3] ss:$0 sm:$0xff]  ;;  %1238 = vmatprep.subr.bf16.mxu1 %v1371_v19  ;;  %v1242_v23 = vpack.c.bf16 %v172_v21, %v171_v18  ;;  %vm176_vm3 = vcmask 261120   ;;  %v291_v45 = vld [vmem:[#allocation2 + $0x28] sm:$0xff]  ;;  %v292_v46 = vld [vmem:[#allocation2 + $0x30] sm:$0xff]  ;;  %s1375_s3 = smov 32  }
  0x16   :  { %v169_v16 = vld [vmem:[#allocation2] sm:$0xff]  ;;  %1158 = vmatprep.mubr.msk.f32.mxu1 %vm1372_vm2, %v1373_v22  ;;  %1244 = vmatprep.subr.bf16.mxu0 %v1371_v19  ;;  %v293_v48 = vld [vmem:[#allocation2 + $0x38] sm:$0xff]  ;;  %vm1073_vm4 = vcmask 91136  }
  0x17   :  { %v1239_v20 = vpack.c.bf16 %v170_v17, %v169_v16  ;;  %1169 = vmatprep.mubr.msk.f32.mxu0 %vm1372_vm2, %v1373_v22  ;;  %v290_v44 = vld [vmem:[#allocation2 + $0x20] sm:$0xff]  ;;  %v1248_v49 = vpack.c.bf16 %v293_v48, %v292_v46  ;;  %v528_v46 = vld [vmem:[#allocation2 + $0x70] sm:$0xff]  ;;  %v529_v48 = vld [vmem:[#allocation2 + $0x78] sm:$0xff] }
  0x18   :  { %v1245_v47 = vpack.c.bf16 %v291_v45, %v290_v44  ;;  %v526_v44 = vld [vmem:[#allocation2 + $0x60] sm:$0xff]  ;;  %v527_v45 = vld [vmem:[#allocation2 + $0x68] sm:$0xff] }
  0x19   :  { %1240 = vmatpush3.bf16.msra.mxu1 %v1239_v20 }
  0x1a   :  { %1241 = vmatprep.subr.bf16.mxu1 %v1371_v19  ;;  %1246 = vmatpush3.bf16.msra.mxu0 %v1245_v47  ;;  %v1257_v47 = vpack.c.bf16 %v527_v45, %v526_v44  ;;  %v760_v45 = vld [vmem:[#allocation2 + $0xb8] sm:$0xff] }
  0x1b   :  { %1247 = vmatprep.subr.bf16.mxu0 %v1371_v19 }
  0x1d   :  { %1243 = vmatpush3.bf16.msra.mxu1 %v1242_v23 }
  0x1e   :  { %1250 = vmatprep.subr.bf16.mxu1 %v1371_v19  ;;  %1249 = vmatpush3.bf16.msra.mxu0 %v1248_v49  ;;  %v1260_v49 = vpack.c.bf16 %v529_v48, %v528_v46 }
  0x1f   :  { %1256 = vmatprep.subr.bf16.mxu0 %v1371_v19 }
  0xe8   :  { %v1149_v4 = vpop.f32.mrb[0].mxu0 }
  0xe9   :  { %v1440_v5 = vadd.f32 %v1149_v4, %v1080_v3  ;;  %v127_v6 = vpop.f32.mrb[1].mxu0 }
  0xea   :  { %v1442_v7 = vadd.f32 %v1080_v3, %v127_v6 }
  0xec   :  { %v1085_v8 = vmul.f32 -1.442695, %v1442_v7 }
  0xee   :  { %1295 = vpow2.f32 %v1085_v8 }
  0xf8   :  { %v1296_v9 = vpop.eup %1295 }
  0xf9   :  { %v147_v10 = vadd.f32 1.0, %v1296_v9 }
  0xfb   :  { %1297 = vrcp.f32 %v147_v10 }
 0x105   :  { %v1298_v12 = vpop.eup %1297 }
 0x106   :  { %v156_v13 = vmul.f32 %v1298_v12, %v1086_v11  ;;  %v163_v25 = vsub.f32 1.0, %v1298_v12  ;;  %v409_v12 = vld [vmem:[#allocation2 + $0x48] sm:$0xff] }
 0x108   :  { %158 = vrot.lane.b32.xlu0 %v156_v13, %s1370_s22  ;;  %v410_v13 = vld [vmem:[#allocation2 + $0x50] sm:$0xff] }
 0x17a   :  { %v159_v14 = vpop.permute.xlu0 %158 }
 0x17b   :  { %v161_v15 = vadd.f32 %v159_v14, %v1442_v7 }
 0x17d   :  { %1299 = vtanh.f32 %v161_v15  ;;  %v411_v15 = vld [vmem:[#allocation2 + $0x58] sm:$0xff] }
 0x17e   :  { %v1254_v16 = vpack.c.bf16 %v411_v15, %v410_v13  ;;  %v643_v13 = vld [vmem:[#allocation2 + $0x98] sm:$0xff] }
 0x187   :  { %v1300_v24 = vpop.eup %1299 }
 0x188   :  { %165 = vrot.lane.b32.xlu0 %v1300_v24, %s1374_s2 }
 0x1fa   :  { %v166_v26 = vpop.permute.xlu0 %165 }
 0x1fb   :  { %v168_v27 = vmul.f32 %v166_v26, %v163_v25 }
 0x1fd   :  { %174 = vrot.lane.b32.xlu1 %v168_v27, %s1374_s2  ;;  %v285_v51 = vrot.slane %v168_v27, 6 }
 0x201   :  { %263 = vrot.lane.b32.xlu1 %v1086_v11, %s1370_s22  ;;  %v408_v11 = vld [vmem:[#allocation2 + $0x40] sm:$0xff] }
 0x202   :  { %v1251_v14 = vpack.c.bf16 %v409_v12, %v408_v11  ;;  %v642_v11 = vld [vmem:[#allocation2 + $0x90] sm:$0xff] }
 0x26f   :  { %v175_v28 = vpop.permute.xlu1 %174 }
 0x270   :  { %1159 = vmatmul.mubr.msk.f32.vlgmr.msra.gmra.mrb[0].mxu1 %vm176_vm3, %v175_v28 }
 0x271   :  { %1180 = vmatprep.mubr.msk.f32.mxu1 %vm1372_vm2, %v1373_v22  ;;  %1252 = vmatpush3.bf16.msra.mxu1 %v1251_v14  ;;  %v1266_v14 = vpack.c.bf16 %v643_v13, %v642_v11 }
 0x272   :  { %1253 = vmatprep.subr.bf16.mxu1 %v1371_v19 }
 0x273   :  { %v1464_v29 = vpop.permute.xlu1 %263 }
 0x275   :  { %1255 = vmatpush3.bf16.msra.mxu1 %v1254_v16 }
 0x276   :  { %1262 = vmatprep.subr.bf16.mxu1 %v1371_v19 }
 0x343   :  { %v1466_v30 = vpop.f32.mrb[0].mxu1 }
 0x344   :  { %v1160_v31 = vpop.f32.mrb[1].mxu1  ;;  %v266_v32 = vadd.f32 %v1464_v29, %v1466_v30  ;;  %v254_v34 = vrot.slane %v1466_v30, 6 }
 0x346   :  { %v268_v33 = vrot.slane %v266_v32, 6  ;;  %v256_v35 = vadd.f32 %v254_v34, %v1442_v7 }
 0x348   :  { %269 = vrot.lane.b32.xlu0 %v268_v33, %s1370_s22  ;;  %v1088_v36 = vmul.f32 -1.442695, %v256_v35 }
 0x34a   :  { %1301 = vpow2.f32 %v1088_v36 }
 0x354   :  { %v1302_v37 = vpop.eup %1301 }
 0x355   :  { %v260_v38 = vadd.f32 1.0, %v1302_v37 }
 0x357   :  { %1303 = vrcp.f32 %v260_v38 }
 0x361   :  { %v1304_v39 = vpop.eup %1303 }
 0x362   :  { %v279_v52 = vsub.f32 1.0, %v1304_v39  ;;  %v287_v55 = vmul.f32 %v1304_v39, %v285_v51 }
 0x3ba   :  { %v270_v40 = vpop.permute.xlu0 %269 }
 0x3bb   :  { %v272_v41 = vmul.f32 %v1304_v39, %v270_v40 }
 0x3bd   :  { %274 = vrot.lane.b32.xlu1 %v272_v41, %s1370_s22 }
 0x42f   :  { %v275_v42 = vpop.permute.xlu1 %274 }
 0x430   :  { %v277_v43 = vadd.f32 %v275_v42, %v1442_v7 }
 0x432   :  { %1305 = vtanh.f32 %v277_v43 }
 0x43c   :  { %v1306_v50 = vpop.eup %1305 }
 0x43d   :  { %281 = vrot.lane.b32.xlu0 %v1306_v50, %s1374_s2 }
 0x4af   :  { %v282_v53 = vpop.permute.xlu0 %281 }
 0x4b0   :  { %v284_v54 = vmul.f32 %v282_v53, %v279_v52 }
 0x4b2   :  { %v288_v56 = vadd.f32 %v287_v55, %v284_v54 }
 0x4b4   :  { %v295_v57 = vrot.slane %v288_v56, 2  ;;  %v403_v18 = vrot.slane %v288_v56, 6 }
 0x4b6   :  { %296 = vrot.lane.b32.xlu1 %v295_v57, %s1374_s2 }
 0x528   :  { %v297_v58 = vpop.permute.xlu1 %296 }
 0x529   :  { %1170 = vmatmul.mubr.msk.f32.vlgmr.msra.gmra.mrb[2].mxu0 %vm176_vm3, %v297_v58 }
 0x52a   :  { %1191 = vmatprep.mubr.msk.f32.mxu0 %vm1372_vm2, %v1373_v22  ;;  %1258 = vmatpush3.bf16.msra.mxu0 %v1257_v47 }
 0x52b   :  { %1259 = vmatprep.subr.bf16.mxu0 %v1371_v19 }
 0x52e   :  { %1261 = vmatpush3.bf16.msra.mxu0 %v1260_v49 }
 0x52f   :  { %1268 = vmatprep.subr.bf16.mxu0 %v1371_v19 }
 0x5fc   :  { %v1482_v59 = vpop.f32.mrb[2].mxu0 }
 0x5fd   :  { %v384_v60 = vadd.f32 %v1482_v59, %v1464_v29  ;;  %v1171_v61 = vpop.f32.mrb[3].mxu0  ;;  %v375_v63 = vrot.slane %v1482_v59, 4 }
 0x5ff   :  { %v386_v62 = vrot.slane %v384_v60, 4  ;;  %v377_v0 = vadd.f32 %v375_v63, %v1442_v7 }
 0x601   :  { %387 = vrot.lane.b32.xlu0 %v386_v62, %s1370_s22  ;;  %v1090_v1 = vmul.f32 -1.442695, %v377_v0 }
 0x603   :  { %1307 = vpow2.f32 %v1090_v1 }
 0x60d   :  { %v1308_v2 = vpop.eup %1307 }
 0x60e   :  { %v381_v3 = vadd.f32 1.0, %v1308_v2 }
 0x610   :  { %1309 = vrcp.f32 %v381_v3 }
 0x61a   :  { %v1310_v4 = vpop.eup %1309 }
 0x61b   :  { %v397_v20 = vsub.f32 1.0, %v1310_v4  ;;  %v405_v23 = vmul.f32 %v1310_v4, %v403_v18 }
 0x673   :  { %v388_v6 = vpop.permute.xlu0 %387 }
 0x674   :  { %v390_v8 = vmul.f32 %v1310_v4, %v388_v6 }
 0x676   :  { %392 = vrot.lane.b32.xlu1 %v390_v8, %s1370_s22 }
 0x6e8   :  { %v393_v9 = vpop.permute.xlu1 %392 }
 0x6e9   :  { %v395_v10 = vadd.f32 %v393_v9, %v1442_v7  ;;  %v640_v9 = vld [vmem:[#allocation2 + $0x80] sm:$0xff] }
 0x6eb   :  { %1311 = vtanh.f32 %v395_v10  ;;  %v641_v10 = vld [vmem:[#allocation2 + $0x88] sm:$0xff] }
 0x6ec   :  { %v1263_v12 = vpack.c.bf16 %v641_v10, %v640_v9  ;;  %v876_v9 = vld [vmem:[#allocation2 + $0xc8] sm:$0xff]  ;;  %v877_v10 = vld [vmem:[#allocation2 + $0xd0] sm:$0xff] }
 0x6f5   :  { %v1312_v17 = vpop.eup %1311 }
 0x6f6   :  { %399 = vrot.lane.b32.xlu0 %v1312_v17, %s1374_s2 }
 0x768   :  { %v400_v21 = vpop.permute.xlu0 %399 }
 0x769   :  { %v402_v24 = vmul.f32 %v400_v21, %v397_v20 }
 0x76b   :  { %v406_v25 = vadd.f32 %v405_v23, %v402_v24 }
 0x76d   :  { %v413_v26 = vrot.slane %v406_v25, 4  ;;  %v521_v51 = vrot.slane %v406_v25, 6 }
 0x76f   :  { %414 = vrot.lane.b32.xlu1 %v413_v26, %s1374_s2 }
 0x7e1   :  { %v415_v27 = vpop.permute.xlu1 %414 }
 0x7e2   :  { %1181 = vmatmul.mubr.msk.f32.vlgmr.msra.gmra.mrb[2].mxu1 %vm176_vm3, %v415_v27 }
 0x7e3   :  { %1202 = vmatprep.mubr.msk.f32.mxu1 %vm1372_vm2, %v1373_v22  ;;  %1264 = vmatpush3.bf16.msra.mxu1 %v1263_v12  ;;  %v878_v12 = vld [vmem:[#allocation2 + $0xd8] sm:$0xff] }
 0x7e4   :  { %1265 = vmatprep.subr.bf16.mxu1 %v1371_v19  ;;  %v1278_v13 = vpack.c.bf16 %v878_v12, %v877_v10 }
 0x7e7   :  { %1267 = vmatpush3.bf16.msra.mxu1 %v1266_v14 }
 0x7e8   :  { %1274 = vmatprep.subr.bf16.mxu1 %v1371_v19 }
 0x8b5   :  { %v1498_v28 = vpop.f32.mrb[2].mxu1 }
 0x8b6   :  { %v502_v31 = vadd.f32 %v1498_v28, %v1464_v29  ;;  %v1182_v32 = vpop.f32.mrb[3].mxu1  ;;  %v493_v34 = vrot.slane %v1498_v28, 2 }
 0x8b8   :  { %v504_v33 = vrot.slane %v502_v31, 2  ;;  %v495_v35 = vadd.f32 %v493_v34, %v1442_v7 }
 0x8ba   :  { %505 = vrot.lane.b32.xlu0 %v504_v33, %s1370_s22  ;;  %v1092_v36 = vmul.f32 -1.442695, %v495_v35 }
 0x8bc   :  { %1313 = vpow2.f32 %v1092_v36 }
 0x8c6   :  { %v1314_v37 = vpop.eup %1313 }
 0x8c7   :  { %v499_v38 = vadd.f32 1.0, %v1314_v37 }
 0x8c9   :  { %1315 = vrcp.f32 %v499_v38 }
 0x8d3   :  { %v1316_v39 = vpop.eup %1315 }
 0x8d4   :  { %v515_v52 = vsub.f32 1.0, %v1316_v39 }
 0x92c   :  { %v506_v40 = vpop.permute.xlu0 %505 }
 0x92d   :  { %v508_v41 = vmul.f32 %v1316_v39, %v506_v40 }
 0x92f   :  { %510 = vrot.lane.b32.xlu1 %v508_v41, %s1370_s22  ;;  %v757_v41 = vld [vmem:[#allocation2 + $0xa0] sm:$0xff] }
 0x9a1   :  { %v511_v42 = vpop.permute.xlu1 %510 }
 0x9a2   :  { %v513_v43 = vadd.f32 %v511_v42, %v1442_v7  ;;  %v523_v7 = vmul.f32 %v1316_v39, %v521_v51  ;;  %v758_v42 = vld [vmem:[#allocation2 + $0xa8] sm:$0xff] }
 0x9a3   :  { %v1269_v44 = vpack.c.bf16 %v758_v42, %v757_v41 }
 0x9a4   :  { %1317 = vtanh.f32 %v513_v43  ;;  %v759_v43 = vld [vmem:[#allocation2 + $0xb0] sm:$0xff] }
 0x9a5   :  { %v1272_v46 = vpack.c.bf16 %v760_v45, %v759_v43  ;;  %v992_v43 = vld [vmem:[%s1597_s5] sm:$0xff]  ;;  %v994_v45 = vld [vmem:[%s1597_s5 + $0x10] sm:$0xff] }
 0x9ae   :  { %v1318_v50 = vpop.eup %1317 }
 0x9af   :  { %517 = vrot.lane.b32.xlu0 %v1318_v50, %s1374_s2 }
 0xa21   :  { %v518_v53 = vpop.permute.xlu0 %517 }
 0xa22   :  { %v520_v54 = vmul.f32 %v518_v53, %v515_v52 }
 0xa24   :  { %v524_v55 = vadd.f32 %v523_v7, %v520_v54 }
 0xa26   :  { %v531_v56 = vrot.slane %v524_v55, 6 }
 0xa28   :  { %532 = vrot.lane.b32.xlu1 %v531_v56, %s1374_s2 }
 0xa9a   :  { %v533_v57 = vpop.permute.xlu1 %532 }
 0xa9b   :  { %1192 = vmatmul.mubr.msk.f32.vlgmr.msra.gmra.mrb[4].mxu0 %vm176_vm3, %v533_v57 }
 0xa9c   :  { %1213 = vmatprep.mubr.msk.f32.mxu0 %vm1372_vm2, %v1373_v22  ;;  %1270 = vmatpush3.bf16.msra.mxu0 %v1269_v44  ;;  %v993_v44 = vld [vmem:[%s1597_s5 + $0x8] sm:$0xff] }
 0xa9d   :  { %1271 = vmatprep.subr.bf16.mxu0 %v1371_v19 }
 0xaa0   :  { %1273 = vmatpush3.bf16.msra.mxu0 %v1272_v46  ;;  %v995_v46 = vld [vmem:[%s1597_s5 + $0x18] sm:$0xff] }
 0xaa1   :  { %1280 = vmatprep.subr.bf16.mxu0 %v1371_v19 }
 0xb6e   :  { %v1514_v58 = vpop.f32.mrb[4].mxu0 }
 0xb6f   :  { %v618_v60 = vadd.f32 %v1514_v58, %v1464_v29  ;;  %v1193_v61 = vpop.f32.mrb[5].mxu0  ;;  %v611_v62 = vadd.f32 %v1514_v58, %v1440_v5 }
 0xb71   :  { %620 = vrot.lane.b32.xlu0 %v618_v60, %s1370_s22  ;;  %v1094_v63 = vmul.f32 -1.442695, %v611_v62 }
 0xb73   :  { %1319 = vpow2.f32 %v1094_v63 }
 0xb7d   :  { %v1320_v0 = vpop.eup %1319 }
 0xb7e   :  { %v615_v1 = vadd.f32 1.0, %v1320_v0 }
 0xb80   :  { %1321 = vrcp.f32 %v615_v1 }
 0xb8a   :  { %v1322_v2 = vpop.eup %1321 }
 0xb8b   :  { %v630_v16 = vsub.f32 1.0, %v1322_v2  ;;  %v637_v18 = vmul.f32 %v1322_v2, %v531_v56 }
 0xbe3   :  { %v621_v3 = vpop.permute.xlu0 %620 }
 0xbe4   :  { %v623_v4 = vmul.f32 %v1322_v2, %v621_v3 }
 0xbe6   :  { %625 = vrot.lane.b32.xlu1 %v623_v4, %s1370_s22 }
 0xc58   :  { %v626_v6 = vpop.permute.xlu1 %625 }
 0xc59   :  { %v628_v8 = vadd.f32 %v626_v6, %v1440_v5 }
 0xc5b   :  { %1323 = vtanh.f32 %v628_v8  ;;  %v875_v8 = vld [vmem:[#allocation2 + $0xc0] sm:$0xff] }
 0xc5c   :  { %v1275_v11 = vpack.c.bf16 %v876_v9, %v875_v8 }
 0xc65   :  { %v1324_v15 = vpop.eup %1323 }
 0xc66   :  { %632 = vrot.lane.b32.xlu0 %v1324_v15, %s1374_s2 }
 0xcd8   :  { %v633_v17 = vpop.permute.xlu0 %632 }
 0xcd9   :  { %v635_v20 = vmul.f32 %v633_v17, %v630_v16 }
 0xcdb   :  { %v638_v21 = vadd.f32 %v637_v18, %v635_v20 }
 0xcdd   :  { %645 = vrot.lane.b32.xlu1 %v638_v21, %s1374_s2  ;;  %v752_v48 = vrot.slane %v638_v21, 6 }
 0xd4f   :  { %v646_v23 = vpop.permute.xlu1 %645 }
 0xd50   :  { %1203 = vmatmul.mubr.msk.f32.vlgmr.msra.gmra.mrb[4].mxu1 %vm176_vm3, %v646_v23 }
 0xd51   :  { %1224 = vmatprep.mubr.msk.f32.mxu1 %vm1372_vm2, %v1373_v22  ;;  %1276 = vmatpush3.bf16.msra.mxu1 %v1275_v11 }
 0xd52   :  { %1277 = vmatprep.subr.bf16.mxu1 %v1371_v19 }
 0xd55   :  { %1279 = vmatpush3.bf16.msra.mxu1 %v1278_v13 }
 0xe23   :  { %v1530_v24 = vpop.f32.mrb[4].mxu1 }
 0xe24   :  { %v733_v25 = vadd.f32 %v1530_v24, %v1464_v29  ;;  %v1204_v26 = vpop.f32.mrb[5].mxu1  ;;  %v724_v31 = vrot.slane %v1530_v24, 6 }
 0xe26   :  { %v735_v27 = vrot.slane %v733_v25, 6  ;;  %v726_v32 = vadd.f32 %v724_v31, %v1440_v5 }
 0xe28   :  { %736 = vrot.lane.b32.xlu0 %v735_v27, %s1370_s22  ;;  %v1096_v33 = vmul.f32 -1.442695, %v726_v32 }
 0xe2a   :  { %1325 = vpow2.f32 %v1096_v33 }
 0xe34   :  { %v1326_v34 = vpop.eup %1325 }
 0xe35   :  { %v730_v35 = vadd.f32 1.0, %v1326_v34 }
 0xe37   :  { %1327 = vrcp.f32 %v730_v35 }
 0xe41   :  { %v1328_v36 = vpop.eup %1327 }
 0xe42   :  { %v746_v49 = vsub.f32 1.0, %v1328_v36  ;;  %v754_v52 = vmul.f32 %v1328_v36, %v752_v48 }
 0xe9a   :  { %v737_v37 = vpop.permute.xlu0 %736 }
 0xe9b   :  { %v739_v38 = vmul.f32 %v1328_v36, %v737_v37 }
 0xe9d   :  { %741 = vrot.lane.b32.xlu1 %v739_v38, %s1370_s22 }
 0xf0f   :  { %v742_v39 = vpop.permute.xlu1 %741 }
 0xf10   :  { %v744_v40 = vadd.f32 %v742_v39, %v1440_v5 }
 0xf12   :  { %1329 = vtanh.f32 %v744_v40 }
 0xf1c   :  { %v1330_v47 = vpop.eup %1329 }
 0xf1d   :  { %748 = vrot.lane.b32.xlu0 %v1330_v47, %s1374_s2 }
 0xf8f   :  { %v749_v50 = vpop.permute.xlu0 %748 }
 0xf90   :  { %v751_v51 = vmul.f32 %v749_v50, %v746_v49 }
 0xf92   :  { %v755_v53 = vadd.f32 %v754_v52, %v751_v51 }
 0xf94   :  { %v762_v7 = vrot.slane %v755_v53, 2  ;;  %v870_v15 = vrot.slane %v755_v53, 6 }
 0xf96   :  { %763 = vrot.lane.b32.xlu1 %v762_v7, %s1374_s2 }
0x1008   :  { %v764_v54 = vpop.permute.xlu1 %763 }
0x1009   :  { %1214 = vmatmul.mubr.msk.f32.vlgmr.msra.gmra.mrb[6].mxu0 %vm176_vm3, %v764_v54 }
0x100a   :  { %1235 = vmatprep.mubr.msk.f32.mxu0 %vm1372_vm2, %v1373_v22 }
0x10dc   :  { %v1546_v55 = vpop.f32.mrb[6].mxu0 }
0x10dd   :  { %v851_v56 = vadd.f32 %v1546_v55, %v1464_v29  ;;  %v1215_v57 = vpop.f32.mrb[7].mxu0  ;;  %v842_v61 = vrot.slane %v1546_v55, 4 }
0x10df   :  { %v853_v60 = vrot.slane %v851_v56, 4  ;;  %v844_v62 = vadd.f32 %v842_v61, %v1440_v5 }
0x10e1   :  { %854 = vrot.lane.b32.xlu0 %v853_v60, %s1370_s22  ;;  %v1098_v63 = vmul.f32 -1.442695, %v844_v62 }
0x10e3   :  { %1331 = vpow2.f32 %v1098_v63 }
0x10ed   :  { %v1332_v0 = vpop.eup %1331 }
0x10ee   :  { %v848_v1 = vadd.f32 1.0, %v1332_v0 }
0x10f0   :  { %1333 = vrcp.f32 %v848_v1 }
0x10fa   :  { %v1334_v2 = vpop.eup %1333 }
0x10fb   :  { %v864_v16 = vsub.f32 1.0, %v1334_v2  ;;  %v872_v18 = vmul.f32 %v1334_v2, %v870_v15 }
0x1153   :  { %v855_v22 = vpop.permute.xlu0 %854 }
0x1154   :  { %v857_v3 = vmul.f32 %v1334_v2, %v855_v22 }
0x1156   :  { %859 = vrot.lane.b32.xlu1 %v857_v3, %s1370_s22 }
0x11c8   :  { %v860_v4 = vpop.permute.xlu1 %859 }
0x11c9   :  { %v862_v6 = vadd.f32 %v860_v4, %v1440_v5 }
0x11cb   :  { %1335 = vtanh.f32 %v862_v6 }
0x11d5   :  { %v1336_v14 = vpop.eup %1335 }
0x11d6   :  { %866 = vrot.lane.b32.xlu0 %v1336_v14, %s1374_s2 }
0x1248   :  { %v867_v17 = vpop.permute.xlu0 %866 }
0x1249   :  { %v869_v20 = vmul.f32 %v867_v17, %v864_v16 }
0x124b   :  { %v873_v21 = vadd.f32 %v872_v18, %v869_v20 }
0x124d   :  { %v880_v23 = vrot.slane %v873_v21, 4  ;;  %v988_v47 = vrot.slane %v873_v21, 6 }
0x124f   :  { %881 = vrot.lane.b32.xlu1 %v880_v23, %s1374_s2 }
0x12c1   :  { %v882_v25 = vpop.permute.xlu1 %881 }
0x12c2   :  { %1225 = vmatmul.mubr.msk.f32.vlgmr.msra.gmra.mrb[6].mxu1 %vm176_vm3, %v882_v25 }
0x1395   :  { %v951_v26 = vpop.f32.mrb[6].mxu1 }
0x1396   :  { %v969_v27 = vadd.f32 %v951_v26, %v1464_v29  ;;  %v1226_v31 = vpop.f32.mrb[7].mxu1  ;;  %v960_v33 = vrot.slane %v951_v26, 2 }
0x1398   :  { %v971_v32 = vrot.slane %v969_v27, 2  ;;  %v962_v34 = vadd.f32 %v960_v33, %v1440_v5 }
0x139a   :  { %972 = vrot.lane.b32.xlu0 %v971_v32, %s1370_s22  ;;  %v1100_v35 = vmul.f32 -1.442695, %v962_v34 }
0x139c   :  { %1337 = vpow2.f32 %v1100_v35 }
0x13a6   :  { %v1338_v36 = vpop.eup %1337 }
0x13a7   :  { %v966_v37 = vadd.f32 1.0, %v1338_v36 }
0x13a9   :  { %1339 = vrcp.f32 %v966_v37 }
0x13b3   :  { %v1340_v38 = vpop.eup %1339 }
0x13b4   :  { %v982_v48 = vsub.f32 1.0, %v1340_v38  ;;  %v990_v50 = vmul.f32 %v1340_v38, %v988_v47 }
0x140c   :  { %v973_v39 = vpop.permute.xlu0 %972 }
0x140d   :  { %v975_v40 = vmul.f32 %v1340_v38, %v973_v39 }
0x140f   :  { %977 = vrot.lane.b32.xlu1 %v975_v40, %s1370_s22 }
0x1481   :  { %v978_v41 = vpop.permute.xlu1 %977 }
0x1482   :  { %v980_v29 = vadd.f32 %v978_v41, %v1440_v5  ;;  %v1281_v5 = vpack.c.bf16 %v993_v44, %v992_v43 }
0x1484   :  { %1341 = vtanh.f32 %v980_v29  ;;  %1282 = vmatpush3.bf16.msra.mxu0 %v1281_v5 }
0x1485   :  { %1283 = vmatprep.subr.bf16.mxu0 %v1371_v19 }
0x148e   :  { %v1342_v42 = vpop.eup %1341 }
0x148f   :  { %984 = vrot.lane.b32.xlu0 %v1342_v42, %s1374_s2 }
0x1493   :  { %250 = vrot.lane.b32.xlu0 %v1466_v30, %s1375_s3  ;;  %v1284_v30 = vpack.c.bf16 %v995_v46, %v994_v45 }
0x1495   :  { %1285 = vmatpush3.bf16.msra.mxu0 %v1284_v30 }
0x1497   :  { %489 = vrot.lane.b32.xlu0 %v1498_v28, %s1375_s3  ;;  %v1084_v28 = vld [vmem:[%s1598_s6] ss:$0 sm:$0xff] }
0x149b   :  { %720 = vrot.lane.b32.xlu0 %v1530_v24, %s1375_s3 }
0x149f   :  { %956 = vrot.lane.b32.xlu0 %v951_v26, %s1375_s3 }
0x1501   :  { %v985_v49 = vpop.permute.xlu0 %984 }
0x1502   :  { %v987_v51 = vmul.f32 %v985_v49, %v982_v48 }
0x1504   :  { %v991_v52 = vadd.f32 %v990_v50, %v987_v51 }
0x1505   :  { %v251_v24 = vpop.permute.xlu0 %250 }
0x1506   :  { %v997_v53 = vrot.slane %v991_v52, 6  ;;  %v253_v54 = vadd.f32 %v1084_v28, %v251_v24 }
0x1508   :  { %998 = vrot.lane.b32.xlu1 %v997_v53, %s1374_s2 }
0x1509   :  { %v490_v57 = vpop.permute.xlu0 %489 }
0x150c   :  { %371 = vrot.lane.b32.xlu1 %v1482_v59, %s1375_s3 }
0x150d   :  { %v721_v59 = vpop.permute.xlu0 %720 }
0x1510   :  { %607 = vrot.lane.b32.xlu1 %v1514_v58, %s1375_s3 }
0x1514   :  { %838 = vrot.lane.b32.xlu1 %v1546_v55, %s1375_s3  ;;  %v957_v55 = vpop.permute.xlu0 %956 }
0x157a   :  { %v999_v19 = vpop.permute.xlu1 %998 }
0x157b   :  { %1236 = vmatmul.mubr.msk.f32.vlgmr.msra.gmra.mrb[8].mxu0 %vm176_vm3, %v999_v19 }
0x157e   :  { %v372_v7 = vpop.permute.xlu1 %371 }
0x157f   :  { %v374_v56 = vadd.f32 %v372_v7, %v253_v54 }
0x1581   :  { %v492_v60 = vadd.f32 %v490_v57, %v374_v56 }
0x1582   :  { %v608_v61 = vpop.permute.xlu1 %607 }
0x1583   :  { %v610_v62 = vadd.f32 %v608_v61, %v492_v60 }
0x1585   :  { %v723_v63 = vadd.f32 %v721_v59, %v610_v62 }
0x1586   :  { %v839_v58 = vpop.permute.xlu1 %838 }
0x1587   :  { %v841_v0 = vadd.f32 %v839_v58, %v723_v63 }
0x1589   :  { %v959_v1 = vadd.f32 %v957_v55, %v841_v0 }
0x164e   :  { %v1068_v2 = vpop.f32.mrb[8].mxu0 }
0x164f   :  { %v1072_v22 = vadd.f32 %v1068_v2, %v959_v1  ;;  %v1237_v3 = vpop.f32.mrb[9].mxu0 }
0x1651   :  { %1074 = vst.msk [vmem:[%s1599_s7] sm:$0x3] %vm1073_vm4, %v1072_v22 }
0x1652   :  { %1079 = vsyncpa [#allocation3], 1 }

</bundles_post_ra>
